<compile_context>
chip_gen: v7x
topology: tpu7x:2x2x1
jax: 0.10.0
libtpu: 0.0.40
codegen_flags: <defaults>
</compile_context>

<pallas_src>
import jax
import jax.numpy as jnp
from jax.experimental import pallas as pl
from jax.experimental.pallas import tpu as pltpu

OBS_SIZE = 5
HIDDEN_SIZE = 128
N_ACTIONS = 4

TILE_B = 512  # batch-tile width on the lane axis (multiple of 128, >= 512)


def _fused_affine_kernel(wc_t_ref, bc_ref, xt_ref, ot_ref):
    # wc_t_ref: (N_ACTIONS, OBS_SIZE)   fused weight  (W2 @ W1)
    # bc_ref:   (N_ACTIONS, 1)          fused bias    (W2 @ b1 + b2)
    # xt_ref:   (OBS_SIZE, TILE_B)      transposed input tile (batch on lanes)
    # ot_ref:   (N_ACTIONS, TILE_B)     transposed output tile (lane-dense store)
    acc = jnp.dot(wc_t_ref[...], xt_ref[...], preferred_element_type=jnp.float32)
    ot_ref[...] = (acc + bc_ref[...]).astype(ot_ref.dtype)


def net_forward(x, w1, b1, w2, b2):
    """x: (B, obs_size); w1: (hidden, obs) PyTorch layout; b1: (hidden,);
    w2: (n_actions, hidden); b2: (n_actions,). Returns (B, n_actions)."""
    B = x.shape[0]

    # --- algebraic fusion (in-graph so grads still reach W1/b1/W2/b2) ---
    wc_t = jnp.dot(w2, w1)                          # (n_actions, obs)
    bc = (jnp.dot(w2, b1) + b2).reshape(N_ACTIONS, 1)

    # --- lane-dense layout: batch on the 128-lane axis, padded to TILE_B ---
    x_t = jnp.transpose(x)                          # (obs, B)
    num_tiles = pl.cdiv(B, TILE_B)
    b_pad = num_tiles * TILE_B
    if b_pad != B:
        x_t = jnp.pad(x_t, ((0, 0), (0, b_pad - B)))

    out_t = pl.pallas_call(
        _fused_affine_kernel,
        out_shape=jax.ShapeDtypeStruct((N_ACTIONS, b_pad), x.dtype),
        grid=(num_tiles,),
        in_specs=[
            pl.BlockSpec((N_ACTIONS, OBS_SIZE), lambda i: (0, 0)),  # fused weight
            pl.BlockSpec((N_ACTIONS, 1), lambda i: (0, 0)),          # fused bias
            pl.BlockSpec((OBS_SIZE, TILE_B), lambda i: (0, i)),      # x^T tile
        ],
        out_specs=pl.BlockSpec((N_ACTIONS, TILE_B), lambda i: (0, i)),
        compiler_params=pltpu.CompilerParams(
            dimension_semantics=("parallel",),
        ),
    )(wc_t, bc, x_t)

    # back to (B, n_actions), dropping batch padding
    return jnp.transpose(out_t[:, :B])


def init_params(key):
    """Deterministic init mimicking PyTorch nn.Linear default (U[-1/sqrt(fan_in), ...])."""
    k1, k2, k3, k4 = jax.random.split(key, 4)
    bound1 = 1.0 / jnp.sqrt(OBS_SIZE)
    bound2 = 1.0 / jnp.sqrt(HIDDEN_SIZE)
    w1 = jax.random.uniform(k1, (HIDDEN_SIZE, OBS_SIZE), jnp.float32, -bound1, bound1)
    b1 = jax.random.uniform(k2, (HIDDEN_SIZE,), jnp.float32, -bound1, bound1)
    w2 = jax.random.uniform(k3, (N_ACTIONS, HIDDEN_SIZE), jnp.float32, -bound2, bound2)
    b2 = jax.random.uniform(k4, (N_ACTIONS,), jnp.float32, -bound2, bound2)
    return w1, b1, w2, b2


# TODO(synk): Net.mutate() is host-side random parameter surgery (state_dict edits),
# not part of the forward pass, so it is intentionally not implemented as a kernel.

if __name__ == "__main__":
    key = jax.random.PRNGKey(0)
    pkey, xkey = jax.random.split(key)
    w1, b1, w2, b2 = init_params(pkey)

    batch = 2
    x = jax.random.normal(xkey, (batch, OBS_SIZE), jnp.float32)

    out = net_forward(x, w1, b1, w2, b2)
    out = jax.block_until_ready(out)

    # Reference check (pure JAX, un-fused two-layer form) against the Pallas kernel.
    ref = (x @ w1.T + b1) @ w2.T + b2
    assert out.shape == (batch, N_ACTIONS)
    assert jnp.allclose(out, ref, atol=1e-4, rtol=1e-4)

    print("KERNEL_OK")
</pallas_src>

<mosaic_0001>
module attributes {stable_mosaic.version = 11 : i64} {
  func.func @_fused_affine_kernel(%arg0: i32, %arg1: memref<4x5xf32, #tpu.memory_space<vmem>>, %arg2: memref<4x1xf32, #tpu.memory_space<vmem>>, %arg3: memref<5x512xf32, #tpu.memory_space<vmem>>, %arg4: memref<4x512xf32, #tpu.memory_space<vmem>>) attributes {dimension_semantics = [#tpu.dimension_semantics<parallel>], iteration_bounds = array<i64: 1>, scalar_prefetch = 0 : i64, scratch_operands = 0 : i64, tpu.core_type = #tpu.core_type<tc>, window_params = [{pipeline_mode = #tpu.pipeline_mode<synchronous>, transform_indices = @transform_0, window_bounds = array<i64: 4, 5>}, {pipeline_mode = #tpu.pipeline_mode<synchronous>, transform_indices = @transform_1, window_bounds = array<i64: 4, 1>}, {transform_indices = @transform_2, window_bounds = array<i64: 5, 512>}, {transform_indices = @transform_3, window_bounds = array<i64: 4, 512>}]} {
    %c0 = arith.constant 0 : index
    %c0_0 = arith.constant 0 : index
    %0 = vector.load %arg1[%c0, %c0_0] : memref<4x5xf32, #tpu.memory_space<vmem>>, vector<4x5xf32>
    %c0_1 = arith.constant 0 : index
    %c0_2 = arith.constant 0 : index
    %1 = vector.load %arg3[%c0_1, %c0_2] : memref<5x512xf32, #tpu.memory_space<vmem>>, vector<5x512xf32>
    %cst = arith.constant dense<0.000000e+00> : vector<4x512xf32>
    %2 = tpu.matmul %0, %1, %cst {dimension_numbers = #tpu.dot_dimension_numbers<[1], [0], [0], [1], [0, 0, 1, 1], [], []>} : vector<4x5xf32>, vector<5x512xf32>, vector<4x512xf32> -> vector<4x512xf32>
    %c0_3 = arith.constant 0 : index
    %c0_4 = arith.constant 0 : index
    %3 = vector.load %arg2[%c0_3, %c0_4] : memref<4x1xf32, #tpu.memory_space<vmem>>, vector<4x1xf32>
    %4 = vector.broadcast %3 : vector<4x1xf32> to vector<4x512xf32>
    %5 = arith.addf %2, %4 : vector<4x512xf32>
    %c0_5 = arith.constant 0 : index
    %c0_6 = arith.constant 0 : index
    %6 = vector.load %arg4[%c0_5, %c0_6] : memref<4x512xf32, #tpu.memory_space<vmem>>, vector<4x512xf32>
    tpu.vector_store %arg4[%c0_5, %c0_6], %5 {strides = array<i32>} : memref<4x512xf32, #tpu.memory_space<vmem>>, vector<4x512xf32>,
    return
  }
  func.func @transform_0(%arg0: i32) -> (i32, i32) {
    %c0_i32 = arith.constant 0 : i32
    %c0_i32_0 = arith.constant 0 : i32
    %c0_i32_1 = arith.constant 0 : i32
    return %c0_i32, %c0_i32_0 : i32, i32
  }
  func.func @transform_1(%arg0: i32) -> (i32, i32) {
    %c0_i32 = arith.constant 0 : i32
    %c0_i32_0 = arith.constant 0 : i32
    %c0_i32_1 = arith.constant 0 : i32
    return %c0_i32, %c0_i32_0 : i32, i32
  }
  func.func @transform_2(%arg0: i32) -> (i32, i32) {
    %c0_i32 = arith.constant 0 : i32
    %c0_i32_0 = arith.constant 0 : i32
    return %c0_i32, %arg0 : i32, i32
  }
  func.func @transform_3(%arg0: i32) -> (i32, i32) {
    %c0_i32 = arith.constant 0 : i32
    %c0_i32_0 = arith.constant 0 : i32
    return %c0_i32, %arg0 : i32, i32
  }
}

</mosaic_0001>

<bundles_post_ra>
// kernel: tpu_custom_call.1
= control target key start
LH: loop header
LB: loop body
LE: loop exit
PB: predicated region body
PF: predicated region fallthrough
CT: control target
= control target key end

     0   :  { %8 = vsyncpa [#allocation3], 0  ;;  %s335_s0 = inlined_call_operand.vmem [shape: f32[4,5], index: 0, kind: input, shape index: {}]   ;;  %s336_s1 = inlined_call_operand.vmem [shape: f32[4,1], index: 1, kind: input, shape index: {}]   ;;  %s337_s2 = inlined_call_operand.hbm [shape: f32[5,512], index: 2, kind: input, shape index: {}]   ;;  %s338_s3 = inlined_call_operand.hbm [shape: f32[4,512], index: 3, kind: output, shape index: {}]  }
   0x1   :  { %9 = vsyncpa [#allocation4], 0  ;;  %s281_s12 = smov [#allocation2]   ;;  %s233_s16 = scalar_lea.hbm %s337_s2, 512 }
   0x2   :  { %s20_s13 = sshll.u32 %s281_s12, 4  ;;  %p234_p0 = scmp.ne.s32.totalorder %s337_s2, %s233_s16  ;;  %s21_s13 = int_to_ptr.vmem [resolvable:$true] %s20_s13 }
   0x3   :  { %p237_p1 = scmp.lt.u32.totalorder %s233_s16, %s337_s2 }
   0x5   :  { %p239_p2 = pnand %p237_p1, %p234_p0 }
   0x7   :  { %242 = shalt.err (!%p239_p2)
}
   0x8   :  { %s243_s21 = scalar_lea.vmem %s21_s13, 512  ;;  %p248_p4 = scmp.lt.s32.totalorder %s21_s13, %s21_s13 }
   0x9   :  { %p244_p3 = scmp.ne.s32.totalorder %s21_s13, %s243_s21  ;;  %p249_p5 = scmp.lt.s32.totalorder %s243_s21, %s243_s21 }
   0xb   :  { %p250_p6 = por %p249_p5, %p248_p4 }
   0xd   :  { %p251_p7 = pnand %p250_p6, %p244_p3 }
   0xf   :  { %254 = shalt.err (!%p251_p7)
}
  0x10   :  { %23 = dma.hbm_to_vmem [thread:$0]  %s337_s2, 512, %s21_s13, [#allocation3]  }
  0x11   :  { %277 = dma.done.wait [#allocation3], 512  }
  0x12   :  { %278 = vsyncadd [#allocation3], 4294966784  ;;  %v282_v0 = vmov 0.0   ;;  %v283_v1 = vmov 0   ;;  %vm42_vm0 = vcmask 1044480   ;;  %vm38_vm1 = vcmask 39936  }
  0x13   :  { %119 = vmatprep.mubr.f32.mxu0 %v282_v0  ;;  %190 = vmatprep.mubr.f32.mxu1 %v282_v0  ;;  %v29_v2 = vld [vmem:[#allocation2 + $0x8] sm:$0x1f]  ;;  %v31_v3 = vld [vmem:[#allocation2 + $0x18] sm:$0x1f]  ;;  %v28_v4 = vld [vmem:[#allocation2] sm:$0x1f] }
  0x14   :  { %232 = vset.pattern.permute.xlu0 %v283_v1  ;;  %222 = vmatprep.subr.msk.mxu0 %vm42_vm0, %v29_v2  ;;  %v30_v5 = vld [vmem:[#allocation2 + $0x10] sm:$0x1f]  ;;  %v27_v6 = vld [vmem:[%s335_s0] sm:$0xf]  ;;  %s284_s27 = smov [#allocation5]  }
  0x15   :  { %225 = vmatprep.subr.msk.mxu1 %vm42_vm0, %v31_v3  ;;  %v32_v7 = vld [vmem:[%s336_s1] sm:$0xf]  ;;  %223 = vmatpush1.msk.msra.mxu0 %vm42_vm0, %v28_v4  ;;  %s213_s28 = sshll.u32 %s284_s27, 4  ;;  %s214_s28 = int_to_ptr.vmem [resolvable:$true] %s213_s28 }
  0x16   :  { %226 = vmatpush1.msk.msra.mxu1 %vm42_vm0, %v30_v5  ;;  %224 = vmatmul.mubr.msk.f32.vlgmr.msra.gmra.mrb[0].mxu0 %vm38_vm1, %v27_v6  ;;  %s255_s0 = scalar_lea.vmem %s214_s28, 256  ;;  %p260_p9 = scmp.lt.s32.totalorder %s214_s28, %s214_s28 }
  0x17   :  { %227 = vmatmul.mubr.msk.f32.vlgmr.msra.gmra.mrb[0].mxu1 %vm38_vm1, %v27_v6  ;;  %35 = vperm.xlu0 %232, %v32_v7   ;;  %p256_p8 = scmp.ne.s32.totalorder %s214_s28, %s255_s0  ;;  %p261_p10 = scmp.lt.s32.totalorder %s255_s0, %s255_s0 }
  0x19   :  { %p262_p11 = por %p261_p10, %p260_p9 }
  0x1b   :  { %p263_p12 = pnand %p262_p11, %p256_p8 }
  0x96   :  { %v36_v8 = vpop.permute.xlu0 %35 }
  0xe9   :  { %v121_v9 = vpop.f32.mrb[0].mxu0 }
  0xea   :  { %v192_v10 = vpop.f32.mrb[0].mxu1  ;;  %v122_v11 = vadd.f32 %v121_v9, %v36_v8  ;;  %v123_v13 = vpop.f32.mrb[1].mxu0 }
  0xeb   :  { %v193_v12 = vadd.f32 %v192_v10, %v36_v8  ;;  %v194_v14 = vpop.f32.mrb[1].mxu1  ;;  %v124_v15 = vadd.f32 %v123_v13, %v36_v8 }
  0xec   :  { %v195_v16 = vadd.f32 %v194_v14, %v36_v8 }
  0xed   :  { %v201_v17 = vcombine.low %v122_v11, %v124_v15 }
  0xee   :  { %v202_v18 = vcombine.low %v193_v12, %v195_v16 }
  0xef   :  { %205 = vst [vmem:[#allocation5] sm:$0xff] %v201_v17 }
  0xf0   :  { %206 = vst [vmem:[#allocation5 + $0x8] sm:$0xff] %v202_v18 }
  0xf1   :  { %266 = shalt.err (!%p263_p12)
}
  0xf2   :  { %s267_s30 = scalar_lea.hbm %s338_s3, 256 }
  0xf3   :  { %p268_p13 = scmp.ne.s32.totalorder %s338_s3, %s267_s30  ;;  %p271_p0 = scmp.lt.u32.totalorder %s267_s30, %s338_s3 }
  0xf5   :  { %p273_p1 = pnand %p271_p0, %p268_p13 }
  0xf7   :  { %276 = shalt.err (!%p273_p1)
}
  0xf8   :  { %216 = dma.vmem_to_hbm [thread:$0]  %s214_s28, 256, %s338_s3, [#allocation4]  }
  0xf9   :  { %279 = dma.done.wait [#allocation4], 256  }
  0xfa   :  { %280 = vsyncadd [#allocation4], 4294967040 }
  0xfb   :  { %220 = vsyncpa [#allocation3], 1 }
  0xfc   :  { %221 = vsyncpa [#allocation4], 1 }

</bundles_post_ra>
